<compile_context>
chip_gen: v7x
topology: tpu7x:2x2x1
jax: 0.10.0
libtpu: 0.0.40
codegen_flags: <defaults>
</compile_context>

<pallas_src>
import jax
import jax.numpy as jnp
from jax import lax
from jax.experimental import pallas as pl
from jax.experimental.pallas import tpu as pltpu


def _frozen_bn_kernel(p_ref, x_ref, o_ref):
    # p: (block_rows, 2) f32 -> column 0 = scale, column 1 = shift.
    # x/o: (block_rows, block_cols) tiles.
    p = p_ref[...]
    scale = p[:, 0:1]
    shift = p[:, 1:2]
    x = x_ref[...].astype(jnp.float32)
    o_ref[...] = (x * scale + shift).astype(o_ref.dtype)


def frozen_batch_norm_2d(
    x, weight, bias, running_mean, running_var, eps=1e-5,
    *, target_tile_bytes=4 * 1024 * 1024,
):
    """x: (N, C, H, W); params: (C,). Matches FrozenBatchNorm2d.forward."""
    N, C, H, W = x.shape
    out_dtype = x.dtype
    itemsize = jnp.dtype(out_dtype).itemsize

    # Precompute per-channel affine once (two tiny XLA ops, f32).
    scale = weight.astype(jnp.float32) * lax.rsqrt(
        running_var.astype(jnp.float32) + jnp.float32(eps)
    )
    shift = bias.astype(jnp.float32) - running_mean.astype(jnp.float32) * scale

    R = N * C
    L = H * W
    x2 = x.reshape(R, L)  # contiguous reshape: free, no HBM pass

    # Row r of x2 corresponds to channel r % C; pack scale/shift together.
    params = jnp.stack([jnp.tile(scale, N), jnp.tile(shift, N)], axis=-1)  # (R, 2)

    LANE = 128
    sub = {4: 8, 2: 16, 1: 32}.get(itemsize, 8)  # dtype-aware sublane packing
    Lp128 = -(-L // LANE) * LANE  # lane-padded row length (for VMEM sizing)

    # Columns: take whole rows if a (sub x full-row) tile fits the budget,
    # otherwise a lane-dense 128-multiple chunk; trailing ragged column block
    # is write-masked by Pallas (no wrapper-side pad/slice passes).
    cols_budget = max(LANE, target_tile_bytes // (sub * itemsize))
    if Lp128 <= cols_budget:
        block_cols = L          # full extent -> exempt from the 128 rule
        eff_cols = Lp128
    else:
        block_cols = (cols_budget // LANE) * LANE
        eff_cols = block_cols

    # Rows: fill the remaining tile budget, rounded to the sublane pack.
    rows_target = max(sub, target_tile_bytes // (eff_cols * itemsize))
    rows_target = -(-rows_target // sub) * sub

    grid_cols = -(-L // block_cols)
    if rows_target >= R:
        if grid_cols == 1 and R > sub:
            # Guarantee >=2 blocks along a parallel axis so v7x's two
            # TensorCores both participate (no effect on v5e/v6e).
            half = -(-R // 2)
            block_rows = -(-half // sub) * sub
        else:
            block_rows = R      # full extent -> exempt from the sublane rule
    else:
        block_rows = int(rows_target)

    grid = (-(-R // block_rows), grid_cols)

    x_spec = pl.BlockSpec((block_rows, block_cols), lambda i, j: (i, j))
    o_spec = pl.BlockSpec((block_rows, block_cols), lambda i, j: (i, j))
    # Param block is constant across the inner (cols) axis -> stays resident.
    p_spec = pl.BlockSpec((block_rows, 2), lambda i, j: (i, 0))

    cost = pl.CostEstimate(
        flops=2 * R * L,
        transcendentals=0,
        bytes_accessed=2 * R * L * itemsize + R * 2 * 4,
    )

    out2 = pl.pallas_call(
        _frozen_bn_kernel,
        out_shape=jax.ShapeDtypeStruct((R, L), out_dtype),
        grid_spec=pltpu.PrefetchScalarGridSpec(
            num_scalar_prefetch=0,
            grid=grid,
            in_specs=[p_spec, x_spec],
            out_specs=o_spec,
        ),
        compiler_params=pltpu.CompilerParams(
            dimension_semantics=("parallel", "parallel"),
            vmem_limit_bytes=32 * 1024 * 1024,
        ),
        cost_estimate=cost,
    )(params, x2)

    return out2.reshape(N, C, H, W)


def _reference(x, weight, bias, running_mean, running_var, eps=1e-5):
    w = weight.reshape(1, -1, 1, 1)
    b = bias.reshape(1, -1, 1, 1)
    rv = running_var.reshape(1, -1, 1, 1)
    rm = running_mean.reshape(1, -1, 1, 1)
    scale = w * lax.rsqrt(rv + eps)
    bias_ = b - rm * scale
    return x * scale + bias_


if __name__ == "__main__":
    def run_case(shape, dtype, target_tile_bytes=4 * 1024 * 1024, seed=0):
        N, C, H, W = shape
        key = jax.random.PRNGKey(seed)
        kx, kw, kb, km, kv = jax.random.split(key, 5)

        x = jax.random.normal(kx, shape, dtype=jnp.float32).astype(dtype)
        weight = jnp.ones((C,), jnp.float32) + 0.1 * jax.random.normal(kw, (C,))
        bias = jnp.zeros((C,), jnp.float32) + 0.1 * jax.random.normal(kb, (C,))
        running_mean = (
            jnp.zeros((C,), jnp.float32) + 0.1 * jax.random.normal(km, (C,))
        )
        running_var = jnp.ones((C,), jnp.float32) + 0.1 * jnp.abs(
            jax.random.normal(kv, (C,))
        )

        out = frozen_batch_norm_2d(
            x, weight, bias, running_mean, running_var,
            target_tile_bytes=target_tile_bytes,
        )
        out = jax.block_until_ready(out)

        ref = _reference(
            x.astype(jnp.float32), weight, bias, running_mean, running_var
        )
        assert out.shape == shape and out.dtype == dtype
        tol = 1e-5 if dtype == jnp.float32 else 2e-2
        assert jnp.allclose(out.astype(jnp.float32), ref, atol=tol, rtol=tol), (
            f"mismatch for shape={shape} dtype={dtype}"
        )

    # Primary small case from the module spec (f32, lane-aligned H*W).
    run_case((2, 4, 16, 16), jnp.float32)
    # Ragged case: H*W % 128 != 0 and R % block_rows != 0; tiny tile budget
    # forces multiple blocks on both axes -> exercises masked partial blocks.
    run_case((3, 5, 11, 13), jnp.float32, target_tile_bytes=4096, seed=1)
    # bf16 case (dtype-aware sublane path, cast-on-store).
    run_case((2, 4, 16, 16), jnp.bfloat16, seed=2)

    print("KERNEL_OK")
</pallas_src>

<mosaic_0001>
module attributes {stable_mosaic.version = 11 : i64} {
  func.func @_frozen_bn_kernel(%arg0: i32, %arg1: i32, %arg2: memref<8x2xf32, #tpu.memory_space<vmem>>, %arg3: memref<8x256xf32, #tpu.memory_space<vmem>>, %arg4: memref<8x256xf32, #tpu.memory_space<vmem>>) attributes {dimension_semantics = [#tpu.dimension_semantics<parallel>, #tpu.dimension_semantics<parallel>], iteration_bounds = array<i64: 1, 1>, scalar_prefetch = 0 : i64, scratch_operands = 0 : i64, tpu.core_type = #tpu.core_type<tc>, window_params = [{transform_indices = @transform_0, window_bounds = array<i64: 8, 2>}, {transform_indices = @transform_1, window_bounds = array<i64: 8, 256>}, {transform_indices = @transform_2, window_bounds = array<i64: 8, 256>}]} {
    %c0 = arith.constant 0 : index
    %c0_0 = arith.constant 0 : index
    %0 = vector.load %arg2[%c0, %c0_0] : memref<8x2xf32, #tpu.memory_space<vmem>>, vector<8x2xf32>
    %1 = vector.extract_strided_slice %0 {offsets = [0, 0], sizes = [8, 1], strides = [1, 1]} : vector<8x2xf32> to vector<8x1xf32>
    %2 = vector.extract_strided_slice %0 {offsets = [0, 1], sizes = [8, 1], strides = [1, 1]} : vector<8x2xf32> to vector<8x1xf32>
    %c0_1 = arith.constant 0 : index
    %c0_2 = arith.constant 0 : index
    %3 = vector.load %arg3[%c0_1, %c0_2] : memref<8x256xf32, #tpu.memory_space<vmem>>, vector<8x256xf32>
    %4 = vector.broadcast %1 : vector<8x1xf32> to vector<8x256xf32>
    %5 = arith.mulf %3, %4 : vector<8x256xf32>
    %6 = vector.broadcast %2 : vector<8x1xf32> to vector<8x256xf32>
    %7 = arith.addf %5, %6 : vector<8x256xf32>
    %c0_3 = arith.constant 0 : index
    %c0_4 = arith.constant 0 : index
    %8 = vector.load %arg4[%c0_3, %c0_4] : memref<8x256xf32, #tpu.memory_space<vmem>>, vector<8x256xf32>
    tpu.vector_store %arg4[%c0_3, %c0_4], %7 {strides = array<i32>} : memref<8x256xf32, #tpu.memory_space<vmem>>, vector<8x256xf32>,
    return
  }
  func.func @transform_0(%arg0: i32, %arg1: i32) -> (i32, i32) {
    %c0_i32 = arith.constant 0 : i32
    %c0_i32_0 = arith.constant 0 : i32
    return %arg0, %c0_i32 : i32, i32
  }
  func.func @transform_1(%arg0: i32, %arg1: i32) -> (i32, i32) {
    %c0_i32 = arith.constant 0 : i32
    return %arg0, %arg1 : i32, i32
  }
  func.func @transform_2(%arg0: i32, %arg1: i32) -> (i32, i32) {
    %c0_i32 = arith.constant 0 : i32
    return %arg0, %arg1 : i32, i32
  }
}

</mosaic_0001>

<bundles_post_ra>
// kernel: tpu_custom_call.1
= control target key start
LH: loop header
LB: loop body
LE: loop exit
PB: predicated region body
PF: predicated region fallthrough
CT: control target
= control target key end

     0   :  { %7 = vsyncpa [#allocation3], 0  ;;  %s157_s0 = inlined_call_operand.vmem [shape: f32[8,2], index: 0, kind: input, shape index: {}]   ;;  %s158_s1 = inlined_call_operand.hbm [shape: f32[8,256], index: 1, kind: input, shape index: {}]   ;;  %s159_s2 = inlined_call_operand.hbm [shape: f32[8,256], index: 2, kind: output, shape index: {}]  }
   0x1   :  { %8 = vsyncpa [#allocation4], 0  ;;  %s111_s9 = smov [#allocation2]   ;;  %s63_s13 = scalar_lea.hbm %s158_s1, 256 }
   0x2   :  { %s17_s10 = sshll.u32 %s111_s9, 4  ;;  %p64_p0 = scmp.ne.s32.totalorder %s158_s1, %s63_s13  ;;  %s18_s10 = int_to_ptr.vmem [resolvable:$true] %s17_s10 }
   0x3   :  { %p67_p1 = scmp.lt.u32.totalorder %s63_s13, %s158_s1 }
   0x5   :  { %p69_p2 = pnand %p67_p1, %p64_p0 }
   0x7   :  { %72 = shalt.err (!%p69_p2)
}
   0x8   :  { %s73_s18 = scalar_lea.vmem %s18_s10, 256  ;;  %p78_p4 = scmp.lt.s32.totalorder %s18_s10, %s18_s10 }
   0x9   :  { %p74_p3 = scmp.ne.s32.totalorder %s18_s10, %s73_s18  ;;  %p79_p5 = scmp.lt.s32.totalorder %s73_s18, %s73_s18 }
   0xb   :  { %p80_p6 = por %p79_p5, %p78_p4 }
   0xd   :  { %p81_p7 = pnand %p80_p6, %p74_p3 }
   0xf   :  { %84 = shalt.err (!%p81_p7)
}
  0x10   :  { %20 = dma.hbm_to_vmem [thread:$0]  %s158_s1, 256, %s18_s10, [#allocation3]  }
  0x11   :  { %107 = dma.done.wait [#allocation3], 256  }
  0x12   :  { %108 = vsyncadd [#allocation3], 4294967040  ;;  %v112_v0 = vmov 0   ;;  %v24_v1 = vld [vmem:[%s157_s0] sm:$0xff]  ;;  %v113_v2 = vmov 1   ;;  %v26_v5 = vld [vmem:[#allocation2 + $0x8] sm:$0xff] }
  0x13   :  { %61 = vset.pattern.permute.xlu0 %v112_v0  ;;  %v25_v4 = vld [vmem:[#allocation2] sm:$0xff]  ;;  %s114_s23 = smov [#allocation5]  }
  0x14   :  { %29 = vperm.xlu0 %61, %v24_v1   ;;  %s48_s24 = sshll.u32 %s114_s23, 4  ;;  %s49_s24 = int_to_ptr.vmem [resolvable:$true] %s48_s24 }
  0x15   :  { %s85_s1 = scalar_lea.vmem %s49_s24, 256  ;;  %p90_p9 = scmp.lt.s32.totalorder %s49_s24, %s49_s24 }
  0x16   :  { %p86_p8 = scmp.ne.s32.totalorder %s49_s24, %s85_s1  ;;  %p91_p10 = scmp.lt.s32.totalorder %s85_s1, %s85_s1 }
  0x18   :  { %62 = vset.pattern.permute.xlu0 %v113_v2  ;;  %p92_p11 = por %p91_p10, %p90_p9 }
  0x19   :  { %35 = vperm.xlu0 %62, %v24_v1  }
  0x1a   :  { %p93_p12 = pnand %p92_p11, %p86_p8 }
  0x93   :  { %v30_v3 = vpop.permute.xlu0 %29 }
  0x94   :  { %v32_v6 = vmul.f32 %v30_v3, %v25_v4  ;;  %v33_v7 = vmul.f32 %v30_v3, %v26_v5 }
  0x98   :  { %v36_v8 = vpop.permute.xlu0 %35 }
  0x99   :  { %v38_v9 = vadd.f32 %v36_v8, %v32_v6  ;;  %v39_v10 = vadd.f32 %v36_v8, %v33_v7 }
  0x9b   :  { %40 = vst [vmem:[#allocation5] sm:$0xff] %v38_v9  ;;  %41 = vst [vmem:[#allocation5 + $0x8] sm:$0xff] %v39_v10 }
  0x9c   :  { %96 = shalt.err (!%p93_p12)
}
  0x9d   :  { %s97_s26 = scalar_lea.hbm %s159_s2, 256 }
  0x9e   :  { %p98_p13 = scmp.ne.s32.totalorder %s159_s2, %s97_s26  ;;  %p101_p0 = scmp.lt.u32.totalorder %s97_s26, %s159_s2 }
  0xa0   :  { %p103_p1 = pnand %p101_p0, %p98_p13 }
  0xa2   :  { %106 = shalt.err (!%p103_p1)
}
  0xa3   :  { %51 = dma.vmem_to_hbm [thread:$0]  %s49_s24, 256, %s159_s2, [#allocation4]  }
  0xa4   :  { %109 = dma.done.wait [#allocation4], 256  }
  0xa5   :  { %110 = vsyncadd [#allocation4], 4294967040 }
  0xa6   :  { %55 = vsyncpa [#allocation3], 1 }
  0xa7   :  { %56 = vsyncpa [#allocation4], 1 }

</bundles_post_ra>
